<compile_context>
chip_gen: v5e
topology: v5e:2x2
jax: 0.10.0
libtpu: 0.0.40
codegen_flags: <defaults>
</compile_context>

<pallas_src>
import jax
import jax.numpy as jnp
import numpy as np
from jax.experimental import pallas as pl
from jax.experimental.pallas import tpu as pltpu


# ----------------------- Pass 1: tiled global sum over HW -------------------

def _pool_kernel(x_ref, sum_ref):
    # x_ref: (1, C, hw_tile); sum_ref: (1, C, 1) f32, resident across hw axis.
    hw_step = pl.program_id(1)

    @pl.when(hw_step == 0)
    def _():
        sum_ref[...] = jnp.zeros_like(sum_ref)

    sum_ref[...] += jnp.sum(x_ref[...].astype(jnp.float32), axis=-1, keepdims=True)


# ----------------------- Pass 2: tiled channel re-scaling -------------------

def _scale_kernel(x_ref, se_ref, o_ref):
    # x_ref/o_ref: (1, C, hw_tile); se_ref: (1, C, 1) f32.
    o_ref[...] = (x_ref[...].astype(jnp.float32) * se_ref[...]).astype(o_ref.dtype)


# ----------------------------- wrapper ---------------------------------------

def _pick_hw_tile(hw, c, target_block_bytes=4 << 20):
    """Largest lane-dense (multiple of 128) tile that divides HW and keeps a
    (1, C, tile) f32 block around/below the target size; else the full extent."""
    if hw % 128 != 0:
        return hw
    max_lanes = max(128, (target_block_bytes // (4 * c)) // 128 * 128)
    max_lanes = min(max_lanes, 2048, hw)
    for t in range(max_lanes, 127, -128):
        if hw % t == 0:
            return t
    return hw


@jax.jit
def channelatt(x_nchw, w1, b1, w2, b2):
    """x_nchw: (B, C, H, W). w1: (C2, C, 3, 3), b1: (C2,),
    w2: (C, C2, 3, 3), b2: (C,)."""
    B, C, H, W = x_nchw.shape
    HW = H * W
    x_flat = x_nchw.reshape(B, C, HW)
    xdtype = x_flat.dtype

    hw_tile = _pick_hw_tile(HW, C)
    n_hw = HW // hw_tile

    block_bytes = C * hw_tile * max(4, x_flat.dtype.itemsize)
    # 2-buffered x input + 2-buffered x output + headroom, clamped for v7x VMEM.
    vmem_limit = int(min(max(6 * block_bytes + (2 << 20), 16 << 20), 64 << 20))

    # ---- Pass 1: global sum over HW (tiled, pipelined) ----
    sums = pl.pallas_call(
        _pool_kernel,
        out_shape=jax.ShapeDtypeStruct((B, C, 1), jnp.float32),
        grid=(B, n_hw),
        in_specs=[pl.BlockSpec((1, C, hw_tile), lambda b, h: (b, 0, h))],
        out_specs=pl.BlockSpec((1, C, 1), lambda b, h: (b, 0, 0)),
        compiler_params=pltpu.CompilerParams(
            dimension_semantics=("parallel", "arbitrary"),
            vmem_limit_bytes=vmem_limit,
        ),
    )(x_flat)

    # ---- SE math, computed exactly once (tiny: O(B*C*C2)) ----
    gp = sums.reshape(B, C) * (1.0 / HW)                        # (B, C) f32
    w1c = jnp.transpose(w1[:, :, 1, 1]).astype(jnp.float32)     # (C, C2) center tap
    w2c = jnp.transpose(w2[:, :, 1, 1]).astype(jnp.float32)     # (C2, C) center tap
    hid = jnp.maximum(gp @ w1c + b1.astype(jnp.float32), 0.0)   # (B, C2)
    se = jax.nn.sigmoid(hid @ w2c + b2.astype(jnp.float32))     # (B, C)
    se3 = se.reshape(B, C, 1)

    # ---- Pass 2: x * se (tiled, lane-dense output) ----
    out = pl.pallas_call(
        _scale_kernel,
        out_shape=jax.ShapeDtypeStruct((B, C, HW), xdtype),
        grid=(B, n_hw),
        in_specs=[
            pl.BlockSpec((1, C, hw_tile), lambda b, h: (b, 0, h)),
            pl.BlockSpec((1, C, 1), lambda b, h: (b, 0, 0)),
        ],
        out_specs=pl.BlockSpec((1, C, hw_tile), lambda b, h: (b, 0, h)),
        compiler_params=pltpu.CompilerParams(
            dimension_semantics=("parallel", "parallel"),
            vmem_limit_bytes=vmem_limit,
        ),
    )(x_flat, se3)

    return out.reshape(B, C, H, W)


# ----------------------------- reference & test ------------------------------

def _reference(x, w1, b1, w2, b2):
    gp = jnp.mean(x.astype(jnp.float32), axis=(2, 3))           # (B, C)
    h = jnp.maximum(gp @ jnp.transpose(w1[:, :, 1, 1]) + b1, 0.0)
    se = jax.nn.sigmoid(h @ jnp.transpose(w2[:, :, 1, 1]) + b2)
    return x * se[:, :, None, None].astype(x.dtype)


if __name__ == "__main__":
    B, C, H, W = 2, 4, 16, 16
    decay = 2
    C2 = C // decay

    key = jax.random.PRNGKey(0)
    kx, kw1, kb1, kw2, kb2 = jax.random.split(key, 5)

    x = jax.random.normal(kx, (B, C, H, W), dtype=jnp.float32)
    # Deterministic synthetic conv parameters (shapes match nn.Conv2d).
    w1 = jax.random.normal(kw1, (C2, C, 3, 3), dtype=jnp.float32) * 0.1
    b1 = jax.random.normal(kb1, (C2,), dtype=jnp.float32) * 0.1
    w2 = jax.random.normal(kw2, (C, C2, 3, 3), dtype=jnp.float32) * 0.1
    b2 = jax.random.normal(kb2, (C,), dtype=jnp.float32) * 0.1

    out = jax.block_until_ready(channelatt(x, w1, b1, w2, b2))
    ref = jax.block_until_ready(_reference(x, w1, b1, w2, b2))
    np.testing.assert_allclose(np.asarray(out), np.asarray(ref), rtol=1e-5, atol=1e-5)

    print("KERNEL_OK")
</pallas_src>

<mosaic_0001>
module attributes {stable_mosaic.version = 11 : i64} {
  func.func @_pool_kernel(%arg0: i32, %arg1: i32, %arg2: memref<1x4x256xf32, #tpu.memory_space<vmem>>, %arg3: memref<1x4x1xf32, #tpu.memory_space<vmem>>) attributes {dimension_semantics = [#tpu.dimension_semantics<parallel>, #tpu.dimension_semantics<arbitrary>], iteration_bounds = array<i64: 2, 1>, scalar_prefetch = 0 : i64, scratch_operands = 0 : i64, tpu.core_type = #tpu.core_type<tc>, window_params = [{transform_indices = @transform_0, window_bounds = array<i64: 1, 4, 256>}, {transform_indices = @transform_1, window_bounds = array<i64: 1, 4, 1>}]} {
    %c0_i32 = arith.constant 0 : i32
    %0 = arith.cmpi eq, %arg1, %c0_i32 : i32
    %1 = arith.extui %0 : i1 to i32
    %c0_i32_0 = arith.constant 0 : i32
    %2 = arith.cmpi ne, %1, %c0_i32_0 : i32
    scf.if %2 {
      %cst_9 = arith.constant 0.000000e+00 : f32
      %9 = vector.broadcast %cst_9 : f32 to vector<1x4x1xf32>
      %c0_10 = arith.constant 0 : index
      %c0_11 = arith.constant 0 : index
      %c0_12 = arith.constant 0 : index
      %10 = vector.load %arg3[%c0_10, %c0_11, %c0_12] : memref<1x4x1xf32, #tpu.memory_space<vmem>>, vector<1x4x1xf32>
      tpu.vector_store %arg3[%c0_10, %c0_11, %c0_12], %9 {strides = array<i32>} : memref<1x4x1xf32, #tpu.memory_space<vmem>>, vector<1x4x1xf32>,
    } else {
    }
    %c0 = arith.constant 0 : index
    %c0_1 = arith.constant 0 : index
    %c0_2 = arith.constant 0 : index
    %3 = vector.load %arg3[%c0, %c0_1, %c0_2] : memref<1x4x1xf32, #tpu.memory_space<vmem>>, vector<1x4x1xf32>
    %c0_3 = arith.constant 0 : index
    %c0_4 = arith.constant 0 : index
    %c0_5 = arith.constant 0 : index
    %4 = vector.load %arg2[%c0_3, %c0_4, %c0_5] : memref<1x4x256xf32, #tpu.memory_space<vmem>>, vector<1x4x256xf32>
    %cst = arith.constant dense<0.000000e+00> : vector<1x4xf32>
    %5 = vector.multi_reduction <add>, %4, %cst [2] : vector<1x4x256xf32> to vector<1x4xf32>
    %6 = vector.shape_cast %5 : vector<1x4xf32> to vector<1x4x1xf32>
    %7 = arith.addf %3, %6 : vector<1x4x1xf32>
    %c0_6 = arith.constant 0 : index
    %c0_7 = arith.constant 0 : index
    %c0_8 = arith.constant 0 : index
    %8 = vector.load %arg3[%c0_6, %c0_7, %c0_8] : memref<1x4x1xf32, #tpu.memory_space<vmem>>, vector<1x4x1xf32>
    tpu.vector_store %arg3[%c0_6, %c0_7, %c0_8], %7 {strides = array<i32>} : memref<1x4x1xf32, #tpu.memory_space<vmem>>, vector<1x4x1xf32>,
    return
  }
  func.func @transform_0(%arg0: i32, %arg1: i32) -> (i32, i32, i32) {
    %c0_i32 = arith.constant 0 : i32
    %c0_i32_0 = arith.constant 0 : i32
    return %arg0, %c0_i32, %arg1 : i32, i32, i32
  }
  func.func @transform_1(%arg0: i32, %arg1: i32) -> (i32, i32, i32) {
    %c0_i32 = arith.constant 0 : i32
    %c0_i32_0 = arith.constant 0 : i32
    %c0_i32_1 = arith.constant 0 : i32
    return %arg0, %c0_i32, %c0_i32_0 : i32, i32, i32
  }
}

module attributes {stable_mosaic.version = 11 : i64} {
  func.func @_scale_kernel(%arg0: i32, %arg1: i32, %arg2: memref<1x4x256xf32, #tpu.memory_space<vmem>>, %arg3: memref<1x4x1xf32, #tpu.memory_space<vmem>>, %arg4: memref<1x4x256xf32, #tpu.memory_space<vmem>>) attributes {dimension_semantics = [#tpu.dimension_semantics<parallel>, #tpu.dimension_semantics<parallel>], iteration_bounds = array<i64: 2, 1>, scalar_prefetch = 0 : i64, scratch_operands = 0 : i64, tpu.core_type = #tpu.core_type<tc>, window_params = [{transform_indices = @transform_0, window_bounds = array<i64: 1, 4, 256>}, {transform_indices = @transform_1, window_bounds = array<i64: 1, 4, 1>}, {transform_indices = @transform_2, window_bounds = array<i64: 1, 4, 256>}]} {
    %c0 = arith.constant 0 : index
    %c0_0 = arith.constant 0 : index
    %c0_1 = arith.constant 0 : index
    %0 = vector.load %arg2[%c0, %c0_0, %c0_1] : memref<1x4x256xf32, #tpu.memory_space<vmem>>, vector<1x4x256xf32>
    %c0_2 = arith.constant 0 : index
    %c0_3 = arith.constant 0 : index
    %c0_4 = arith.constant 0 : index
    %1 = vector.load %arg3[%c0_2, %c0_3, %c0_4] : memref<1x4x1xf32, #tpu.memory_space<vmem>>, vector<1x4x1xf32>
    %2 = vector.broadcast %1 : vector<1x4x1xf32> to vector<1x4x256xf32>
    %3 = arith.mulf %0, %2 : vector<1x4x256xf32>
    %c0_5 = arith.constant 0 : index
    %c0_6 = arith.constant 0 : index
    %c0_7 = arith.constant 0 : index
    %4 = vector.load %arg4[%c0_5, %c0_6, %c0_7] : memref<1x4x256xf32, #tpu.memory_space<vmem>>, vector<1x4x256xf32>
    tpu.vector_store %arg4[%c0_5, %c0_6, %c0_7], %3 {strides = array<i32>} : memref<1x4x256xf32, #tpu.memory_space<vmem>>, vector<1x4x256xf32>,
    return
  }
  func.func @transform_0(%arg0: i32, %arg1: i32) -> (i32, i32, i32) {
    %c0_i32 = arith.constant 0 : i32
    %c0_i32_0 = arith.constant 0 : i32
    return %arg0, %c0_i32, %arg1 : i32, i32, i32
  }
  func.func @transform_1(%arg0: i32, %arg1: i32) -> (i32, i32, i32) {
    %c0_i32 = arith.constant 0 : i32
    %c0_i32_0 = arith.constant 0 : i32
    %c0_i32_1 = arith.constant 0 : i32
    return %arg0, %c0_i32, %c0_i32_0 : i32, i32, i32
  }
  func.func @transform_2(%arg0: i32, %arg1: i32) -> (i32, i32, i32) {
    %c0_i32 = arith.constant 0 : i32
    %c0_i32_0 = arith.constant 0 : i32
    return %arg0, %c0_i32, %arg1 : i32, i32, i32
  }
}

</mosaic_0001>

<bundles_post_ra>
// kernel: channelatt.3
= control target key start
LH: loop header
LB: loop body
LE: loop exit
PB: predicated region body
PF: predicated region fallthrough
CT: control target
= control target key end

     0   :  { %s394_s9 = smov 0   ;;  %s396_s10 = smov 0   ;;  %s427_s0 = inlined_call_operand.vmem [shape: f32[2,4,256], index: 0, kind: input, shape index: {}]   ;;  %s428_s1 = inlined_call_operand.vmem [shape: f32[2,4,1], index: 1, kind: input, shape index: {}]   ;;  %s429_s2 = inlined_call_operand.vmem [shape: f32[2,4,256], index: 2, kind: output, shape index: {}]  }
   0x1   :  { %s398_s11 = smov 0  }
   0x2 LB: > { %s24_s12 = sadd.s32 1, %s371_s10  ;;  %p316_p0 = scmp.ge.s32.totalorder %s375_s11, 1  ;;  %s375_s11 = sphi %s398_s11, %s12_s11   ;;  %s371_s10 = sphi %s396_s10, %s431_s10   ;;  %s367_s9 = sphi %s394_s9, %s430_s9  }
   0x3   : > { %p26_p1 = scmp.ge.s32.totalorder %s24_s12, 2  ;;  %p142_p2 = scmp.lt.s32.totalorder %s375_s11, 3 }
   0x5   : > { %s433_s12 = smov (%p26_p1, %s24_s12), 0  ;;  %p143_p3 = pnand %p316_p0, %p142_p2 }
   0x6   : > { %p177_p4 = scmp.lt.s32.totalorder (!%p143_p3), %s367_s9, 1 }
   0x7   : > { %146 = sbr.rel (%p143_p3) target bundleno = 136 (0x88), region = 28 }
   0xc   : > { %v377_v0 = vmov 0   ;;  %s435_s9 = smov (!%p177_p4, %s367_s9), 1  ;;  %v378_v2 = vmov 839922192  }
   0xd   : > { %352 = vset.pattern.permute.xlu0 %v377_v0  ;;  %s319_s13 = sshll.u32 %s435_s9, 2  ;;  %v207_v3 = vunpack.c.l.s4 %v378_v2  ;;  %s324_s17 = sshll.u32 %s435_s9, 3 }
   0xe   : > { %s189_s16 = scalar_lea.vmem %s428_s1, %s319_s13  ;;  %s184_s20 = scalar_lea.vmem %s427_s0, %s324_s17 }
   0xf   : > { %v201_v1 = vld [vmem:[%s189_s16] sm:$0xf]  ;;  %v208_v4 = vunpack.c.0.s8 %v207_v3  ;;  %s198_s23 = scalar_lea.vmem %s429_s2, %s324_s17 }
  0x10   : > { %204 = vperm.xlu0 %352, %v201_v1   ;;  %v200_v6 = vld [vmem:[%s184_s20] sm:$0xff] }
  0x82   : > { %v205_v5 = vpop.permute.xlu0 %204 }
  0x83   : > { %v209_v7 = vperm.slane %v205_v5, %v208_v4 }
  0x85   : > { %v211_v8 = vmul.f32 %v209_v7, %v200_v6 }
  0x87   : > { %212 = vst [vmem:[%s198_s23] sm:$0xff] %v211_v8 }
  0x88 PF: > { %s12_s11 = sadd.s32 1, %s375_s11   ;;  %s430_s9 = smov %s371_s10 }
  0x89   : > { %p9_p5 = scmp.ge.s32.totalorder %s12_s11, 4   ;;  %s431_s10 = smov %s433_s12 }
  0x8b   :  { %11 = sbr.rel (!%p9_p5) target bundleno = 2 (0x2), region = 61 }

// kernel: channelatt.2
= control target key start
LH: loop header
LB: loop body
LE: loop exit
PB: predicated region body
PF: predicated region fallthrough
CT: control target
= control target key end

     0   :  { %s304_s6 = smov 0   ;;  %s306_s7 = smov 0   ;;  %s336_s0 = inlined_call_operand.vmem [shape: f32[2,4,256], index: 0, kind: input, shape index: {}]   ;;  %s337_s1 = inlined_call_operand.vmem [shape: f32[2,4,1], index: 1, kind: output, shape index: {}]  }
   0x1   :  { %s308_s8 = smov 0  }
   0x2 LB: > { %s23_s9 = sadd.s32 1, %s287_s7  ;;  %p237_p0 = scmp.ge.s32.totalorder %s291_s8, 1  ;;  %s291_s8 = sphi %s308_s8, %s11_s8   ;;  %s287_s7 = sphi %s306_s7, %s339_s7   ;;  %s283_s6 = sphi %s304_s6, %s338_s6  }
   0x3   : > { %p25_p1 = scmp.ge.s32.totalorder %s23_s9, 2  ;;  %p106_p2 = scmp.lt.s32.totalorder %s291_s8, 3 }
   0x5   : > { %s341_s9 = smov (%p25_p1, %s23_s9), 0  ;;  %p107_p3 = pnand %p237_p0, %p106_p2 }
   0x6   : > { %p130_p4 = scmp.lt.s32.totalorder (!%p107_p3), %s283_s6, 1 }
   0x7   : > { %110 = sbr.rel (%p107_p3) target bundleno = 146 (0x92), region = 24 }
   0xc   : > { %s343_s6 = smov (!%p130_p4, %s283_s6), 1  ;;  %vm147_vm0 = vcmask 3072   ;;  %v293_v1 = vmov 0.0   ;;  %vm157_vm1 = vcmask 1043456  }
   0xd   : > { %s243_s10 = sshll.u32 %s343_s6, 3  ;;  %s240_s11 = sshll.u32 %s343_s6, 2 }
   0xe   : > { %s137_s14 = scalar_lea.vmem %s336_s0, %s243_s10  ;;  %s142_s17 = scalar_lea.vmem %s337_s1, %s240_s11 }
   0xf   : > { %v150_v0 = vld [vmem:[%s137_s14] sm:$0xff]  ;;  %148 = vst.msk [vmem:[%s142_s17] sm:$0xf] %vm147_vm0, %v293_v1 }
  0x10   : > { %152 = vst [vmem:[#allocation1] ss:$2 sm:$0xff] %v150_v0 }
  0x16   : > { %v149_v7 = vld [vmem:[%s142_s17] sm:$0xf] }
  0x17   : > { %v153_v2 = vld.sshfl [vmem:[#allocation1] sm:$0xff pattern:$0x75316420]  ;;  %v154_v3 = vld.sshfl [vmem:[#allocation1 + $0x8] sm:$0xff pattern:$0x75316420] }
  0x18   : > { %v158_v4 = vsel %vm157_vm1, %v153_v2, 0.0  ;;  %v159_v5 = vsel %vm157_vm1, %v154_v3, 0.0 }
  0x19   : > { %v160_v6 = vadd.f32 %v159_v5, %v158_v4 }
  0x1b   : > { %161 = vadd.xlane.f32.xlu0 %v160_v6 }
  0x8e   : > { %v162_v8 = vpop.xlane.xlu0 %161 }
  0x8f   : > { %v163_v9 = vadd.f32 %v162_v8, %v149_v7 }
  0x91   : > { %165 = vst.msk [vmem:[%s142_s17] sm:$0xf] %vm147_vm0, %v163_v9 }
  0x92 PF: > { %s11_s8 = sadd.s32 1, %s291_s8   ;;  %s338_s6 = smov %s287_s7 }
  0x93   : > { %p8_p5 = scmp.ge.s32.totalorder %s11_s8, 4   ;;  %s339_s7 = smov %s341_s9 }
  0x95   :  { %10 = sbr.rel (!%p8_p5) target bundleno = 2 (0x2), region = 58 }

</bundles_post_ra>
